<compile_context>
chip_gen: v5e
topology: v5e:2x2
jax: 0.10.0
libtpu: 0.0.40
codegen_flags: <defaults>
</compile_context>

<pallas_src>
import jax
import jax.numpy as jnp
from jax.experimental import pallas as pl
from jax.experimental.pallas import tpu as pltpu

NEG_SLOPE = 0.01      # torch.nn.LeakyReLU default negative_slope
COS_EPS = 1e-6        # torch.nn.CosineSimilarity(dim=-1, eps=1e-6)
SLAB_LANES = 128      # lane-dense packed-output width


def _leaky_relu(x):
    return jnp.where(x >= 0, x, NEG_SLOPE * x)


def _predictor_head_kernel(
    uAB_ref, gold_ref, exps_ref, lbl_ref, eT_ref, enrm_ref,
    w1_ref, b1_ref, w1hq_ref, w1he_ref, ba_ref, w2_ref, b2_ref,
    slab_ref, outcos_ref,
):
    f32 = jnp.float32
    bf16 = jnp.bfloat16
    TB = uAB_ref.shape[0]            # batch rows handled by this grid step
    H = gold_ref.shape[1]

    uAB = uAB_ref[...]               # [TB, 2H] f32  = cat([user_emb_A, user_emb_B], -1)
    gold = gold_ref[...]             # [TB, H]  f32
    exps = exps_ref[...]             # [3, TB, H] f32  (k=0 exp1/match, 1 exp2, 2 exp3)
    lbl = lbl_ref[...]               # [TB, 1] f32  batch_label values in {0.,1.,2.}

    # ---- linear1: query = LeakyReLU([uA, uB] @ W1 + b1) -- one bf16 MXU matmul, f32 acc.
    query = _leaky_relu(
        jnp.dot(uAB.astype(bf16), w1_ref[...], preferred_element_type=f32)
        + b1_ref[...])                                                    # [TB, H] f32
    q_bf = query.astype(bf16)

    # ---- three Linear(2H->H) heads, split into:
    #      query-half: ONE wide matmul [TB,H] @ [H,3H]  (head k lives in lanes k*H:(k+1)*H)
    #      exp-half:   batched K=H contraction over the 3 heads
    qpart = jnp.dot(q_bf, w1hq_ref[...], preferred_element_type=f32)      # [TB, 3H] f32
    epart = jnp.einsum('kbh,kho->kbo', exps.astype(bf16), w1he_ref[...],
                       preferred_element_type=f32)                        # [3, TB, H] f32

    # ---- Linear(H->1) + Sigmoid as a row reduction (no lane-sparse N=1 MXU matmul).
    def head_prob(k):
        h = _leaky_relu(qpart[:, k * H:(k + 1) * H] + epart[k] + ba_ref[k])   # [TB, H]
        logit = jnp.sum(h * w2_ref[k], axis=-1, keepdims=True) + b2_ref[k]
        return jax.nn.sigmoid(logit)                                          # [TB, 1]

    # torch.cat((class_dismatch, class_midmatch, class_match), dim=-1)
    scores = jnp.concatenate([head_prob(2), head_prob(1), head_prob(0)], axis=-1)

    # ---- cosine similarities: norms once, EUP reciprocal for the divide.
    qn = jnp.sqrt(jnp.sum(query * query, axis=-1, keepdims=True))         # [TB, 1]

    def cos_from(num, other_norm):
        denom = jnp.maximum(other_norm * qn, COS_EPS)
        return num * pl.reciprocal(denom, approx=True)

    num_t = jnp.sum(exps * query[None], axis=-1, keepdims=True)           # [3, TB, 1]
    nrm_t = jnp.sqrt(jnp.sum(exps * exps, axis=-1, keepdims=True))        # [3, TB, 1]
    # in_cos_score column order follows torch.stack([exp3, exp2, exp1], dim=1)
    incos = jnp.concatenate(
        [cos_from(num_t[2], nrm_t[2]),
         cos_from(num_t[1], nrm_t[1]),
         cos_from(num_t[0], nrm_t[0])], axis=-1)                          # [TB, 3]

    gold_num = jnp.sum(gold * query, axis=-1, keepdims=True)
    gold_nrm = jnp.sqrt(jnp.sum(gold * gold, axis=-1, keepdims=True))
    goldcos = cos_from(gold_num, gold_nrm)                                # [TB, 1]

    # lane-dense packed slab: [scores(3) | incos(3) | goldcos(1) | zero pad] -> one dense store
    pad = jnp.zeros((TB, SLAB_LANES - 7), dtype=f32)
    slab_ref[...] = jnp.concatenate([scores, incos, goldcos, pad], axis=-1)

    # ---- out_cos_score[i, b] = cos(exps[b, batch_label[i]], query[i])
    # one-hot built in-kernel from the label column; selection folded into the LHS.
    oh0 = (lbl == 0.0).astype(f32)          # label 0 -> exp3  (torch stack order)
    oh1 = (lbl == 1.0).astype(f32)          # label 1 -> exp2
    oh2 = (lbl == 2.0).astype(f32)          # label 2 -> exp1

    # Q3 blocks match eT row blocks: [e3 | e2 | e1] along the K (sublane) axis.
    Q3 = jnp.concatenate([oh0 * query, oh1 * query, oh2 * query],
                         axis=-1).astype(bf16)                            # [TB, 3H]
    sel_dot = jnp.dot(Q3, eT_ref[...], preferred_element_type=f32)        # [TB, Np]

    enrm = enrm_ref[...]                                                  # [3, Np] f32
    sel_norm = (oh0 * enrm[0:1, :] + oh1 * enrm[1:2, :]
                + oh2 * enrm[2:3, :])                                     # [TB, Np]
    denom = jnp.maximum(sel_norm * qn, COS_EPS)
    outcos_ref[...] = sel_dot * pl.reciprocal(denom, approx=True)


def _pad_rows(x, n):
    r = x.shape[0]
    if r == n:
        return x
    return jnp.pad(x, ((0, n - r),) + ((0, 0),) * (x.ndim - 1))


def predictor_head(user_emb_A, user_emb_B, exp1, exp2, exp3, gold_exp_pl,
                   batch_label, params):
    """Pallas implementation of the PredictorModel head (post-BERT / post-IV_model)."""
    B, H = user_emb_A.shape
    f32 = jnp.float32
    bf16 = jnp.bfloat16

    # ---- batch tiling: single tile for small batches, else 128-row tiles.
    # (TB=256 on v6e/v7x fills the 256-wide MXU better when VMEM allows.)
    if B <= 128:
        Bp = max(((B + 7) // 8) * 8, 8)
        TB = Bp
    else:
        Bp = ((B + 127) // 128) * 128
        TB = 128
    grid = (Bp // TB,)

    # lane-padded width for the out_cos matmul / output (unmasked dense stores)
    Np = max(((Bp + 127) // 128) * 128, 128)

    uAB = _pad_rows(jnp.concatenate(
        [user_emb_A.astype(f32), user_emb_B.astype(f32)], axis=-1), Bp)    # [Bp, 2H]
    gold = _pad_rows(gold_exp_pl.astype(f32), Bp)                          # [Bp, H]
    exps3 = jnp.stack(
        [_pad_rows(exp1.astype(f32), Bp),
         _pad_rows(exp2.astype(f32), Bp),
         _pad_rows(exp3.astype(f32), Bp)], axis=0)                         # [3, Bp, H] f32

    # pinned, pre-transposed bf16 operand for the out_cos matmul:
    # K-blocks ordered [e3 | e2 | e1] to match label 0/1/2 -> exp3/exp2/exp1.
    e3N = _pad_rows(exp3.astype(f32), Np)                                  # [Np, H]
    e2N = _pad_rows(exp2.astype(f32), Np)
    e1N = _pad_rows(exp1.astype(f32), Np)
    eT = jnp.concatenate([e3N.T, e2N.T, e1N.T], axis=0).astype(bf16)       # [3H, Np]
    # all-batch exp norms hoisted out of the kernel (computed once, f32)
    enrm = jnp.stack(
        [jnp.sqrt(jnp.sum(e3N * e3N, axis=-1)),
         jnp.sqrt(jnp.sum(e2N * e2N, axis=-1)),
         jnp.sqrt(jnp.sum(e1N * e1N, axis=-1))], axis=0)                   # [3, Np]

    # batch_label as a single f32 column (one-hot is built in-kernel)
    lbl = jnp.zeros((Bp, 1), f32).at[:B, 0].set(
        batch_label.reshape(-1).astype(f32))                               # [Bp, 1]

    # MXU-feeding weights -> bf16 (f32 accumulation); biases / w2 row stay f32.
    w1 = params['w1'].astype(bf16)                                         # [2H, H]
    b1 = params['b1'].astype(f32)                                          # [1, H]
    # split the per-head [2H, H] weights into query-half (packed wide) and exp-half
    w1hq = jnp.transpose(params['w1h'][:, :H, :], (1, 0, 2)).reshape(H, 3 * H).astype(bf16)
    w1he = params['w1h'][:, H:, :].astype(bf16)                            # [3, H, H]
    ba = params['ba'].astype(f32)                                          # [3, 1, H]
    w2 = params['w2'].astype(f32)                                          # [3, 1, H]
    b2 = params['b2'].astype(f32)                                          # [3, 1, 1]

    in_specs = [
        pl.BlockSpec((TB, 2 * H), lambda i: (i, 0)),        # uAB    (per-tile rows)
        pl.BlockSpec((TB, H), lambda i: (i, 0)),            # gold
        pl.BlockSpec((3, TB, H), lambda i: (0, i, 0)),      # exps3  (per-tile rows)
        pl.BlockSpec((TB, 1), lambda i: (i, 0)),            # label column
        pl.BlockSpec((3 * H, Np), lambda i: (0, 0)),        # eT     (pinned, bf16)
        pl.BlockSpec((3, Np), lambda i: (0, 0)),            # enrm   (pinned)
        pl.BlockSpec((2 * H, H), lambda i: (0, 0)),         # w1     (weights pinned)
        pl.BlockSpec((1, H), lambda i: (0, 0)),             # b1
        pl.BlockSpec((H, 3 * H), lambda i: (0, 0)),         # w1hq
        pl.BlockSpec((3, H, H), lambda i: (0, 0, 0)),       # w1he
        pl.BlockSpec((3, 1, H), lambda i: (0, 0, 0)),       # ba
        pl.BlockSpec((3, 1, H), lambda i: (0, 0, 0)),       # w2
        pl.BlockSpec((3, 1, 1), lambda i: (0, 0, 0)),       # b2
    ]
    out_specs = (
        pl.BlockSpec((TB, SLAB_LANES), lambda i: (i, 0)),   # packed slab
        pl.BlockSpec((TB, Np), lambda i: (i, 0)),           # out_cos rows (lane-dense)
    )
    out_shape = (
        jax.ShapeDtypeStruct((Bp, SLAB_LANES), f32),
        jax.ShapeDtypeStruct((Bp, Np), f32),
    )

    slab, outcos = pl.pallas_call(
        _predictor_head_kernel,
        grid=grid,
        in_specs=in_specs,
        out_specs=out_specs,
        out_shape=out_shape,
        compiler_params=pltpu.CompilerParams(
            dimension_semantics=("parallel",),
            vmem_limit_bytes=64 * 1024 * 1024),   # above v5e/v6e 16/32 MiB scoped defaults
    )(uAB, gold, exps3, lbl, eT, enrm, w1, b1, w1hq, w1he, ba, w2, b2)

    return {
        'exp_score': slab[:B, 0:3],
        'in_cos_score': slab[:B, 3:6],
        'golden_cos_score': slab[:B, 6],
        'out_cos_score': outcos[:B, :B],
    }


def init_params(key, hidden):
    """Deterministic init matching nn.Linear default (U(-1/sqrt(fan_in), +))."""
    H = hidden

    def lin(k, fan_in, shape):
        bound = 1.0 / float(fan_in) ** 0.5
        return jax.random.uniform(k, shape, jnp.float32, -bound, bound)

    ks = jax.random.split(key, 14)
    params = {'w1': lin(ks[0], 2 * H, (2 * H, H)),       # linear1 weight^T
              'b1': lin(ks[1], 2 * H, (1, H))}
    w1h, ba, w2, b2 = [], [], [], []
    for i in range(3):                                   # head order: match, midmatch, dismatch
        w1h.append(lin(ks[2 + 4 * i], 2 * H, (2 * H, H)))
        ba.append(lin(ks[3 + 4 * i], 2 * H, (1, H)))
        w2.append(lin(ks[4 + 4 * i], H, (1, H)))         # Linear(H,1) weight as a row
        b2.append(lin(ks[5 + 4 * i], H, (1, 1)))
    params['w1h'] = jnp.stack(w1h)    # [3, 2H, H]
    params['ba'] = jnp.stack(ba)      # [3, 1, H]
    params['w2'] = jnp.stack(w2)      # [3, 1, H]
    params['b2'] = jnp.stack(b2)      # [3, 1, 1]
    return params


def reference_head(uA, uB, e1, e2, e3, gold, batch_label, p):
    """Pure-jnp reference mirroring the PyTorch forward (model_type='train')."""
    def lrelu(x):
        return jnp.where(x >= 0, x, NEG_SLOPE * x)

    query = lrelu(jnp.concatenate([uA, uB], axis=-1) @ p['w1'] + p['b1'])

    def head(k, exp):
        h = lrelu(jnp.concatenate([query, exp], axis=-1) @ p['w1h'][k] + p['ba'][k])
        return jax.nn.sigmoid(jnp.sum(h * p['w2'][k], axis=-1, keepdims=True) + p['b2'][k])

    cm, cmm, cd = head(0, e1), head(1, e2), head(2, e3)
    scores = jnp.concatenate([cd, cmm, cm], axis=-1)

    def cos(a, b):
        num = jnp.sum(a * b, axis=-1)
        na = jnp.sqrt(jnp.sum(a * a, axis=-1))
        nb = jnp.sqrt(jnp.sum(b * b, axis=-1))
        return num / jnp.maximum(na * nb, COS_EPS)

    exps = jnp.stack([e3, e2, e1], axis=1)                  # [B, 3, H]
    incos = cos(exps, query[:, None, :])                    # [B, 3]
    goldcos = cos(gold, query)                              # [B]
    sel = exps[:, batch_label.reshape(-1), :]               # [B, B, H]
    fi = jnp.transpose(sel, (1, 0, 2))                      # [B, B, H]
    outcos = cos(fi, query[:, None, :])                     # [B, B]
    return scores, incos, goldcos, outcos


if __name__ == "__main__":
    B, H = 4, 32
    key = jax.random.PRNGKey(0)
    kp, k1, k2, k3, k4, k5, k6 = jax.random.split(key, 7)

    params = init_params(kp, H)
    user_emb_A = jax.random.normal(k1, (B, H), jnp.float32)
    user_emb_B = jax.random.normal(k2, (B, H), jnp.float32)
    exp1 = jax.random.normal(k3, (B, H), jnp.float32)        # match explanation pooler
    exp2 = jax.random.normal(k4, (B, H), jnp.float32)        # midmatch
    exp3 = jax.random.normal(k5, (B, H), jnp.float32)        # dismatch
    gold = jax.random.normal(k6, (B, H), jnp.float32)        # gold explanation pooler
    batch_label = jnp.array([0, 2, 1, 0], dtype=jnp.int32)   # values in {0,1,2}

    out = predictor_head(user_emb_A, user_emb_B, exp1, exp2, exp3, gold,
                         batch_label, params)
    jax.block_until_ready(out)

    ref_scores, ref_incos, ref_gold, ref_outcos = reference_head(
        user_emb_A, user_emb_B, exp1, exp2, exp3, gold, batch_label, params)

    assert jnp.allclose(out['exp_score'], ref_scores, atol=2e-2, rtol=2e-2)
    assert jnp.allclose(out['in_cos_score'], ref_incos, atol=2e-2, rtol=2e-2)
    assert jnp.allclose(out['golden_cos_score'], ref_gold, atol=2e-2, rtol=2e-2)
    assert jnp.allclose(out['out_cos_score'], ref_outcos, atol=2e-2, rtol=2e-2)

    print("KERNEL_OK")
</pallas_src>

<mosaic_0001>
module attributes {stable_mosaic.version = 11 : i64} {
  func.func @_predictor_head_kernel(%arg0: i32, %arg1: memref<8x64xf32, #tpu.memory_space<vmem>>, %arg2: memref<8x32xf32, #tpu.memory_space<vmem>>, %arg3: memref<3x8x32xf32, #tpu.memory_space<vmem>>, %arg4: memref<8x1xf32, #tpu.memory_space<vmem>>, %arg5: memref<96x128xbf16, #tpu.memory_space<vmem>>, %arg6: memref<3x128xf32, #tpu.memory_space<vmem>>, %arg7: memref<64x32xbf16, #tpu.memory_space<vmem>>, %arg8: memref<1x32xf32, #tpu.memory_space<vmem>>, %arg9: memref<32x96xbf16, #tpu.memory_space<vmem>>, %arg10: memref<3x32x32xbf16, #tpu.memory_space<vmem>>, %arg11: memref<3x1x32xf32, #tpu.memory_space<vmem>>, %arg12: memref<3x1x32xf32, #tpu.memory_space<vmem>>, %arg13: memref<3x1x1xf32, #tpu.memory_space<vmem>>, %arg14: memref<8x128xf32, #tpu.memory_space<vmem>>, %arg15: memref<8x128xf32, #tpu.memory_space<vmem>>) attributes {dimension_semantics = [#tpu.dimension_semantics<parallel>], iteration_bounds = array<i64: 1>, scalar_prefetch = 0 : i64, scratch_operands = 0 : i64, tpu.core_type = #tpu.core_type<tc>, window_params = [{transform_indices = @transform_0, window_bounds = array<i64: 8, 64>}, {transform_indices = @transform_1, window_bounds = array<i64: 8, 32>}, {transform_indices = @transform_2, window_bounds = array<i64: 3, 8, 32>}, {transform_indices = @transform_3, window_bounds = array<i64: 8, 1>}, {pipeline_mode = #tpu.pipeline_mode<synchronous>, transform_indices = @transform_4, window_bounds = array<i64: 96, 128>}, {pipeline_mode = #tpu.pipeline_mode<synchronous>, transform_indices = @transform_5, window_bounds = array<i64: 3, 128>}, {pipeline_mode = #tpu.pipeline_mode<synchronous>, transform_indices = @transform_6, window_bounds = array<i64: 64, 32>}, {pipeline_mode = #tpu.pipeline_mode<synchronous>, transform_indices = @transform_7, window_bounds = array<i64: 1, 32>}, {pipeline_mode = #tpu.pipeline_mode<synchronous>, transform_indices = @transform_8, window_bounds = array<i64: 32, 96>}, {pipeline_mode = #tpu.pipeline_mode<synchronous>, transform_indices = @transform_9, window_bounds = array<i64: 3, 32, 32>}, {pipeline_mode = #tpu.pipeline_mode<synchronous>, transform_indices = @transform_10, window_bounds = array<i64: 3, 1, 32>}, {pipeline_mode = #tpu.pipeline_mode<synchronous>, transform_indices = @transform_11, window_bounds = array<i64: 3, 1, 32>}, {pipeline_mode = #tpu.pipeline_mode<synchronous>, transform_indices = @transform_12, window_bounds = array<i64: 3, 1, 1>}, {transform_indices = @transform_13, window_bounds = array<i64: 8, 128>}, {transform_indices = @transform_14, window_bounds = array<i64: 8, 128>}]} {
    %c0 = arith.constant 0 : index
    %c0_0 = arith.constant 0 : index
    %0 = vector.load %arg1[%c0, %c0_0] : memref<8x64xf32, #tpu.memory_space<vmem>>, vector<8x64xf32>
    %c0_1 = arith.constant 0 : index
    %c0_2 = arith.constant 0 : index
    %1 = vector.load %arg2[%c0_1, %c0_2] : memref<8x32xf32, #tpu.memory_space<vmem>>, vector<8x32xf32>
    %c0_3 = arith.constant 0 : index
    %c0_4 = arith.constant 0 : index
    %c0_5 = arith.constant 0 : index
    %2 = vector.load %arg3[%c0_3, %c0_4, %c0_5] : memref<3x8x32xf32, #tpu.memory_space<vmem>>, vector<3x8x32xf32>
    %c0_6 = arith.constant 0 : index
    %c0_7 = arith.constant 0 : index
    %3 = vector.load %arg4[%c0_6, %c0_7] : memref<8x1xf32, #tpu.memory_space<vmem>>, vector<8x1xf32>
    %4 = arith.truncf %0 : vector<8x64xf32> to vector<8x64xbf16>
    %c0_8 = arith.constant 0 : index
    %c0_9 = arith.constant 0 : index
    %5 = vector.load %arg7[%c0_8, %c0_9] : memref<64x32xbf16, #tpu.memory_space<vmem>>, vector<64x32xbf16>
    %cst = arith.constant dense<0.000000e+00> : vector<8x32xf32>
    %6 = tpu.matmul %4, %5, %cst {dimension_numbers = #tpu.dot_dimension_numbers<[1], [0], [0], [1], [0, 0, 1, 1], [], []>} : vector<8x64xbf16>, vector<64x32xbf16>, vector<8x32xf32> -> vector<8x32xf32>
    %c0_10 = arith.constant 0 : index
    %c0_11 = arith.constant 0 : index
    %7 = vector.load %arg8[%c0_10, %c0_11] : memref<1x32xf32, #tpu.memory_space<vmem>>, vector<1x32xf32>
    %8 = vector.broadcast %7 : vector<1x32xf32> to vector<8x32xf32>
    %9 = arith.addf %6, %8 : vector<8x32xf32>
    %cst_12 = arith.constant 0.000000e+00 : f32
    %10 = vector.broadcast %cst_12 : f32 to vector<8x32xf32>
    %11 = arith.cmpf oge, %9, %10 : vector<8x32xf32>
    %cst_13 = arith.constant 0.00999999977 : f32
    %12 = vector.broadcast %cst_13 : f32 to vector<8x32xf32>
    %13 = arith.mulf %12, %9 : vector<8x32xf32>
    %14 = arith.select %11, %9, %13 : vector<8x32xi1>, vector<8x32xf32>
    %15 = arith.truncf %14 : vector<8x32xf32> to vector<8x32xbf16>
    %c0_14 = arith.constant 0 : index
    %c0_15 = arith.constant 0 : index
    %16 = vector.load %arg9[%c0_14, %c0_15] : memref<32x96xbf16, #tpu.memory_space<vmem>>, vector<32x96xbf16>
    %cst_16 = arith.constant dense<0.000000e+00> : vector<8x96xf32>
    %17 = tpu.matmul %15, %16, %cst_16 {dimension_numbers = #tpu.dot_dimension_numbers<[1], [0], [0], [1], [0, 0, 1, 1], [], []>} : vector<8x32xbf16>, vector<32x96xbf16>, vector<8x96xf32> -> vector<8x96xf32>
    %18 = arith.truncf %2 : vector<3x8x32xf32> to vector<3x8x32xbf16>
    %c0_17 = arith.constant 0 : index
    %c0_18 = arith.constant 0 : index
    %c0_19 = arith.constant 0 : index
    %19 = vector.load %arg10[%c0_17, %c0_18, %c0_19] : memref<3x32x32xbf16, #tpu.memory_space<vmem>>, vector<3x32x32xbf16>
    "tpu.trace_start"() <{level = 10 : i32, message = "kbh,kho->kbo"}> : () -> ()
    %cst_20 = arith.constant dense<0.000000e+00> : vector<3x8x32xf32>
    %20 = tpu.matmul %18, %19, %cst_20 {dimension_numbers = #tpu.dot_dimension_numbers<[2], [1], [1], [2], [0, 0, 0, 1, 1, 2], [0], [0]>} : vector<3x8x32xbf16>, vector<3x32x32xbf16>, vector<3x8x32xf32> -> vector<3x8x32xf32>
    "tpu.trace_stop"() : () -> ()
    %21 = vector.extract_strided_slice %17 {offsets = [0, 64], sizes = [8, 32], strides = [1, 1]} : vector<8x96xf32> to vector<8x32xf32>
    %22 = vector.extract_strided_slice %20 {offsets = [2, 0, 0], sizes = [1, 8, 32], strides = [1, 1, 1]} : vector<3x8x32xf32> to vector<1x8x32xf32>
    %23 = vector.shape_cast %22 : vector<1x8x32xf32> to vector<8x32xf32>
    %24 = arith.addf %21, %23 : vector<8x32xf32>
    %c2 = arith.constant 2 : index
    %c0_21 = arith.constant 0 : index
    %c0_22 = arith.constant 0 : index
    %25 = vector.load %arg11[%c2, %c0_21, %c0_22] : memref<3x1x32xf32, #tpu.memory_space<vmem>>, vector<1x1x32xf32>
    %26 = vector.shape_cast %25 : vector<1x1x32xf32> to vector<1x32xf32>
    %27 = vector.broadcast %26 : vector<1x32xf32> to vector<8x32xf32>
    %28 = arith.addf %24, %27 : vector<8x32xf32>
    %cst_23 = arith.constant 0.000000e+00 : f32
    %29 = vector.broadcast %cst_23 : f32 to vector<8x32xf32>
    %30 = arith.cmpf oge, %28, %29 : vector<8x32xf32>
    %cst_24 = arith.constant 0.00999999977 : f32
    %31 = vector.broadcast %cst_24 : f32 to vector<8x32xf32>
    %32 = arith.mulf %31, %28 : vector<8x32xf32>
    %33 = arith.select %30, %28, %32 : vector<8x32xi1>, vector<8x32xf32>
    %c2_25 = arith.constant 2 : index
    %c0_26 = arith.constant 0 : index
    %c0_27 = arith.constant 0 : index
    %34 = vector.load %arg12[%c2_25, %c0_26, %c0_27] : memref<3x1x32xf32, #tpu.memory_space<vmem>>, vector<1x1x32xf32>
    %35 = vector.shape_cast %34 : vector<1x1x32xf32> to vector<1x32xf32>
    %36 = vector.broadcast %35 : vector<1x32xf32> to vector<8x32xf32>
    %37 = arith.mulf %33, %36 : vector<8x32xf32>
    %cst_28 = arith.constant dense<0.000000e+00> : vector<8xf32>
    %38 = vector.multi_reduction <add>, %37, %cst_28 [1] : vector<8x32xf32> to vector<8xf32>
    %39 = vector.shape_cast %38 : vector<8xf32> to vector<8x1xf32>
    %c2_29 = arith.constant 2 : index
    %c0_30 = arith.constant 0 : index
    %c0_31 = arith.constant 0 : index
    %40 = vector.load %arg13[%c2_29, %c0_30, %c0_31] : memref<3x1x1xf32, #tpu.memory_space<vmem>>, vector<1x1x1xf32>
    %41 = vector.shape_cast %40 : vector<1x1x1xf32> to vector<1x1xf32>
    %42 = vector.broadcast %41 : vector<1x1xf32> to vector<8x1xf32>
    %43 = arith.addf %39, %42 : vector<8x1xf32>
    %44 = arith.negf %43 : vector<8x1xf32>
    %45 = math.exp %44 : vector<8x1xf32>
    %cst_32 = arith.constant 1.000000e+00 : f32
    %46 = vector.broadcast %cst_32 : f32 to vector<8x1xf32>
    %47 = arith.addf %46, %45 : vector<8x1xf32>
    %48 = arith.divf %46, %47 : vector<8x1xf32>
    %49 = vector.extract_strided_slice %17 {offsets = [0, 32], sizes = [8, 32], strides = [1, 1]} : vector<8x96xf32> to vector<8x32xf32>
    %50 = vector.extract_strided_slice %20 {offsets = [1, 0, 0], sizes = [1, 8, 32], strides = [1, 1, 1]} : vector<3x8x32xf32> to vector<1x8x32xf32>
    %51 = vector.shape_cast %50 : vector<1x8x32xf32> to vector<8x32xf32>
    %52 = arith.addf %49, %51 : vector<8x32xf32>
    %c1 = arith.constant 1 : index
    %c0_33 = arith.constant 0 : index
    %c0_34 = arith.constant 0 : index
    %53 = vector.load %arg11[%c1, %c0_33, %c0_34] : memref<3x1x32xf32, #tpu.memory_space<vmem>>, vector<1x1x32xf32>
    %54 = vector.shape_cast %53 : vector<1x1x32xf32> to vector<1x32xf32>
    %55 = vector.broadcast %54 : vector<1x32xf32> to vector<8x32xf32>
    %56 = arith.addf %52, %55 : vector<8x32xf32>
    %cst_35 = arith.constant 0.000000e+00 : f32
    %57 = vector.broadcast %cst_35 : f32 to vector<8x32xf32>
    %58 = arith.cmpf oge, %56, %57 : vector<8x32xf32>
    %cst_36 = arith.constant 0.00999999977 : f32
    %59 = vector.broadcast %cst_36 : f32 to vector<8x32xf32>
    %60 = arith.mulf %59, %56 : vector<8x32xf32>
    %61 = arith.select %58, %56, %60 : vector<8x32xi1>, vector<8x32xf32>
    %c1_37 = arith.constant 1 : index
    %c0_38 = arith.constant 0 : index
    %c0_39 = arith.constant 0 : index
    %62 = vector.load %arg12[%c1_37, %c0_38, %c0_39] : memref<3x1x32xf32, #tpu.memory_space<vmem>>, vector<1x1x32xf32>
    %63 = vector.shape_cast %62 : vector<1x1x32xf32> to vector<1x32xf32>
    %64 = vector.broadcast %63 : vector<1x32xf32> to vector<8x32xf32>
    %65 = arith.mulf %61, %64 : vector<8x32xf32>
    %cst_40 = arith.constant dense<0.000000e+00> : vector<8xf32>
    %66 = vector.multi_reduction <add>, %65, %cst_40 [1] : vector<8x32xf32> to vector<8xf32>
    %67 = vector.shape_cast %66 : vector<8xf32> to vector<8x1xf32>
    %c1_41 = arith.constant 1 : index
    %c0_42 = arith.constant 0 : index
    %c0_43 = arith.constant 0 : index
    %68 = vector.load %arg13[%c1_41, %c0_42, %c0_43] : memref<3x1x1xf32, #tpu.memory_space<vmem>>, vector<1x1x1xf32>
    %69 = vector.shape_cast %68 : vector<1x1x1xf32> to vector<1x1xf32>
    %70 = vector.broadcast %69 : vector<1x1xf32> to vector<8x1xf32>
    %71 = arith.addf %67, %70 : vector<8x1xf32>
    %72 = arith.negf %71 : vector<8x1xf32>
    %73 = math.exp %72 : vector<8x1xf32>
    %cst_44 = arith.constant 1.000000e+00 : f32
    %74 = vector.broadcast %cst_44 : f32 to vector<8x1xf32>
    %75 = arith.addf %74, %73 : vector<8x1xf32>
    %76 = arith.divf %74, %75 : vector<8x1xf32>
    %77 = vector.extract_strided_slice %17 {offsets = [0, 0], sizes = [8, 32], strides = [1, 1]} : vector<8x96xf32> to vector<8x32xf32>
    %78 = vector.extract_strided_slice %20 {offsets = [0, 0, 0], sizes = [1, 8, 32], strides = [1, 1, 1]} : vector<3x8x32xf32> to vector<1x8x32xf32>
    %79 = vector.shape_cast %78 : vector<1x8x32xf32> to vector<8x32xf32>
    %80 = arith.addf %77, %79 : vector<8x32xf32>
    %c0_45 = arith.constant 0 : index
    %c0_46 = arith.constant 0 : index
    %c0_47 = arith.constant 0 : index
    %81 = vector.load %arg11[%c0_45, %c0_46, %c0_47] : memref<3x1x32xf32, #tpu.memory_space<vmem>>, vector<1x1x32xf32>
    %82 = vector.shape_cast %81 : vector<1x1x32xf32> to vector<1x32xf32>
    %83 = vector.broadcast %82 : vector<1x32xf32> to vector<8x32xf32>
    %84 = arith.addf %80, %83 : vector<8x32xf32>
    %cst_48 = arith.constant 0.000000e+00 : f32
    %85 = vector.broadcast %cst_48 : f32 to vector<8x32xf32>
    %86 = arith.cmpf oge, %84, %85 : vector<8x32xf32>
    %cst_49 = arith.constant 0.00999999977 : f32
    %87 = vector.broadcast %cst_49 : f32 to vector<8x32xf32>
    %88 = arith.mulf %87, %84 : vector<8x32xf32>
    %89 = arith.select %86, %84, %88 : vector<8x32xi1>, vector<8x32xf32>
    %c0_50 = arith.constant 0 : index
    %c0_51 = arith.constant 0 : index
    %c0_52 = arith.constant 0 : index
    %90 = vector.load %arg12[%c0_50, %c0_51, %c0_52] : memref<3x1x32xf32, #tpu.memory_space<vmem>>, vector<1x1x32xf32>
    %91 = vector.shape_cast %90 : vector<1x1x32xf32> to vector<1x32xf32>
    %92 = vector.broadcast %91 : vector<1x32xf32> to vector<8x32xf32>
    %93 = arith.mulf %89, %92 : vector<8x32xf32>
    %cst_53 = arith.constant dense<0.000000e+00> : vector<8xf32>
    %94 = vector.multi_reduction <add>, %93, %cst_53 [1] : vector<8x32xf32> to vector<8xf32>
    %95 = vector.shape_cast %94 : vector<8xf32> to vector<8x1xf32>
    %c0_54 = arith.constant 0 : index
    %c0_55 = arith.constant 0 : index
    %c0_56 = arith.constant 0 : index
    %96 = vector.load %arg13[%c0_54, %c0_55, %c0_56] : memref<3x1x1xf32, #tpu.memory_space<vmem>>, vector<1x1x1xf32>
    %97 = vector.shape_cast %96 : vector<1x1x1xf32> to vector<1x1xf32>
    %98 = vector.broadcast %97 : vector<1x1xf32> to vector<8x1xf32>
    %99 = arith.addf %95, %98 : vector<8x1xf32>
    %100 = arith.negf %99 : vector<8x1xf32>
    %101 = math.exp %100 : vector<8x1xf32>
    %cst_57 = arith.constant 1.000000e+00 : f32
    %102 = vector.broadcast %cst_57 : f32 to vector<8x1xf32>
    %103 = arith.addf %102, %101 : vector<8x1xf32>
    %104 = arith.divf %102, %103 : vector<8x1xf32>
    %105 = tpu.concatenate %48, %76, %104 in 1 : vector<8x1xf32>, vector<8x1xf32>, vector<8x1xf32> -> vector<8x3xf32>
    %106 = arith.mulf %14, %14 : vector<8x32xf32>
    %cst_58 = arith.constant dense<0.000000e+00> : vector<8xf32>
    %107 = vector.multi_reduction <add>, %106, %cst_58 [1] : vector<8x32xf32> to vector<8xf32>
    %108 = vector.shape_cast %107 : vector<8xf32> to vector<8x1xf32>
    %109 = math.sqrt %108 : vector<8x1xf32>
    %110 = vector.shape_cast %14 : vector<8x32xf32> to vector<1x8x32xf32>
    %111 = vector.broadcast %110 : vector<1x8x32xf32> to vector<3x8x32xf32>
    %112 = arith.mulf %2, %111 : vector<3x8x32xf32>
    %cst_59 = arith.constant dense<0.000000e+00> : vector<3x8xf32>
    %113 = vector.multi_reduction <add>, %112, %cst_59 [2] : vector<3x8x32xf32> to vector<3x8xf32>
    %114 = vector.shape_cast %113 : vector<3x8xf32> to vector<3x8x1xf32>
    %115 = arith.mulf %2, %2 : vector<3x8x32xf32>
    %cst_60 = arith.constant dense<0.000000e+00> : vector<3x8xf32>
    %116 = vector.multi_reduction <add>, %115, %cst_60 [2] : vector<3x8x32xf32> to vector<3x8xf32>
    %117 = vector.shape_cast %116 : vector<3x8xf32> to vector<3x8x1xf32>
    %118 = math.sqrt %117 : vector<3x8x1xf32>
    %119 = vector.extract_strided_slice %114 {offsets = [2, 0, 0], sizes = [1, 8, 1], strides = [1, 1, 1]} : vector<3x8x1xf32> to vector<1x8x1xf32>
    %120 = vector.shape_cast %119 : vector<1x8x1xf32> to vector<8x1xf32>
    %121 = vector.extract_strided_slice %118 {offsets = [2, 0, 0], sizes = [1, 8, 1], strides = [1, 1, 1]} : vector<3x8x1xf32> to vector<1x8x1xf32>
    %122 = vector.shape_cast %121 : vector<1x8x1xf32> to vector<8x1xf32>
    %123 = arith.mulf %122, %109 : vector<8x1xf32>
    %cst_61 = arith.constant 9.99999997E-7 : f32
    %124 = vector.broadcast %cst_61 : f32 to vector<8x1xf32>
    %125 = arith.maximumf %123, %124 : vector<8x1xf32>
    %126 = tpu.reciprocal %125 {approx = true} : vector<8x1xf32> -> vector<8x1xf32>
    %127 = arith.mulf %120, %126 : vector<8x1xf32>
    %128 = vector.extract_strided_slice %114 {offsets = [1, 0, 0], sizes = [1, 8, 1], strides = [1, 1, 1]} : vector<3x8x1xf32> to vector<1x8x1xf32>
    %129 = vector.shape_cast %128 : vector<1x8x1xf32> to vector<8x1xf32>
    %130 = vector.extract_strided_slice %118 {offsets = [1, 0, 0], sizes = [1, 8, 1], strides = [1, 1, 1]} : vector<3x8x1xf32> to vector<1x8x1xf32>
    %131 = vector.shape_cast %130 : vector<1x8x1xf32> to vector<8x1xf32>
    %132 = arith.mulf %131, %109 : vector<8x1xf32>
    %cst_62 = arith.constant 9.99999997E-7 : f32
    %133 = vector.broadcast %cst_62 : f32 to vector<8x1xf32>
    %134 = arith.maximumf %132, %133 : vector<8x1xf32>
    %135 = tpu.reciprocal %134 {approx = true} : vector<8x1xf32> -> vector<8x1xf32>
    %136 = arith.mulf %129, %135 : vector<8x1xf32>
    %137 = vector.extract_strided_slice %114 {offsets = [0, 0, 0], sizes = [1, 8, 1], strides = [1, 1, 1]} : vector<3x8x1xf32> to vector<1x8x1xf32>
    %138 = vector.shape_cast %137 : vector<1x8x1xf32> to vector<8x1xf32>
    %139 = vector.extract_strided_slice %118 {offsets = [0, 0, 0], sizes = [1, 8, 1], strides = [1, 1, 1]} : vector<3x8x1xf32> to vector<1x8x1xf32>
    %140 = vector.shape_cast %139 : vector<1x8x1xf32> to vector<8x1xf32>
    %141 = arith.mulf %140, %109 : vector<8x1xf32>
    %cst_63 = arith.constant 9.99999997E-7 : f32
    %142 = vector.broadcast %cst_63 : f32 to vector<8x1xf32>
    %143 = arith.maximumf %141, %142 : vector<8x1xf32>
    %144 = tpu.reciprocal %143 {approx = true} : vector<8x1xf32> -> vector<8x1xf32>
    %145 = arith.mulf %138, %144 : vector<8x1xf32>
    %146 = tpu.concatenate %127, %136, %145 in 1 : vector<8x1xf32>, vector<8x1xf32>, vector<8x1xf32> -> vector<8x3xf32>
    %147 = arith.mulf %1, %14 : vector<8x32xf32>
    %cst_64 = arith.constant dense<0.000000e+00> : vector<8xf32>
    %148 = vector.multi_reduction <add>, %147, %cst_64 [1] : vector<8x32xf32> to vector<8xf32>
    %149 = vector.shape_cast %148 : vector<8xf32> to vector<8x1xf32>
    %150 = arith.mulf %1, %1 : vector<8x32xf32>
    %cst_65 = arith.constant dense<0.000000e+00> : vector<8xf32>
    %151 = vector.multi_reduction <add>, %150, %cst_65 [1] : vector<8x32xf32> to vector<8xf32>
    %152 = vector.shape_cast %151 : vector<8xf32> to vector<8x1xf32>
    %153 = math.sqrt %152 : vector<8x1xf32>
    %154 = arith.mulf %153, %109 : vector<8x1xf32>
    %cst_66 = arith.constant 9.99999997E-7 : f32
    %155 = vector.broadcast %cst_66 : f32 to vector<8x1xf32>
    %156 = arith.maximumf %154, %155 : vector<8x1xf32>
    %157 = tpu.reciprocal %156 {approx = true} : vector<8x1xf32> -> vector<8x1xf32>
    %158 = arith.mulf %149, %157 : vector<8x1xf32>
    %cst_67 = arith.constant 0.000000e+00 : f32
    %159 = vector.broadcast %cst_67 : f32 to vector<8x121xf32>
    %160 = tpu.concatenate %105, %146, %158, %159 in 1 : vector<8x3xf32>, vector<8x3xf32>, vector<8x1xf32>, vector<8x121xf32> -> vector<8x128xf32>
    %c0_68 = arith.constant 0 : index
    %c0_69 = arith.constant 0 : index
    %161 = vector.load %arg14[%c0_68, %c0_69] : memref<8x128xf32, #tpu.memory_space<vmem>>, vector<8x128xf32>
    tpu.vector_store %arg14[%c0_68, %c0_69], %160 {strides = array<i32>} : memref<8x128xf32, #tpu.memory_space<vmem>>, vector<8x128xf32>,
    %cst_70 = arith.constant 0.000000e+00 : f32
    %162 = vector.broadcast %cst_70 : f32 to vector<8x1xf32>
    %163 = arith.cmpf oeq, %3, %162 : vector<8x1xf32>
    %164 = arith.extui %163 : vector<8x1xi1> to vector<8x1xi32>
    %165 = arith.sitofp %164 : vector<8x1xi32> to vector<8x1xf32>
    %cst_71 = arith.constant 1.000000e+00 : f32
    %166 = vector.broadcast %cst_71 : f32 to vector<8x1xf32>
    %167 = arith.cmpf oeq, %3, %166 : vector<8x1xf32>
    %168 = arith.extui %167 : vector<8x1xi1> to vector<8x1xi32>
    %169 = arith.sitofp %168 : vector<8x1xi32> to vector<8x1xf32>
    %cst_72 = arith.constant 2.000000e+00 : f32
    %170 = vector.broadcast %cst_72 : f32 to vector<8x1xf32>
    %171 = arith.cmpf oeq, %3, %170 : vector<8x1xf32>
    %172 = arith.extui %171 : vector<8x1xi1> to vector<8x1xi32>
    %173 = arith.sitofp %172 : vector<8x1xi32> to vector<8x1xf32>
    %174 = vector.broadcast %165 : vector<8x1xf32> to vector<8x32xf32>
    %175 = arith.mulf %174, %14 : vector<8x32xf32>
    %176 = vector.broadcast %169 : vector<8x1xf32> to vector<8x32xf32>
    %177 = arith.mulf %176, %14 : vector<8x32xf32>
    %178 = vector.broadcast %173 : vector<8x1xf32> to vector<8x32xf32>
    %179 = arith.mulf %178, %14 : vector<8x32xf32>
    %180 = tpu.concatenate %175, %177, %179 in 1 : vector<8x32xf32>, vector<8x32xf32>, vector<8x32xf32> -> vector<8x96xf32>
    %181 = arith.truncf %180 : vector<8x96xf32> to vector<8x96xbf16>
    %c0_73 = arith.constant 0 : index
    %c0_74 = arith.constant 0 : index
    %182 = vector.load %arg5[%c0_73, %c0_74] : memref<96x128xbf16, #tpu.memory_space<vmem>>, vector<96x128xbf16>
    %cst_75 = arith.constant dense<0.000000e+00> : vector<8x128xf32>
    %183 = tpu.matmul %181, %182, %cst_75 {dimension_numbers = #tpu.dot_dimension_numbers<[1], [0], [0], [1], [0, 0, 1, 1], [], []>} : vector<8x96xbf16>, vector<96x128xbf16>, vector<8x128xf32> -> vector<8x128xf32>
    %c0_76 = arith.constant 0 : index
    %c0_77 = arith.constant 0 : index
    %184 = vector.load %arg6[%c0_76, %c0_77] : memref<3x128xf32, #tpu.memory_space<vmem>>, vector<3x128xf32>
    %185 = vector.extract_strided_slice %184 {offsets = [0, 0], sizes = [1, 128], strides = [1, 1]} : vector<3x128xf32> to vector<1x128xf32>
    %186 = vector.broadcast %165 : vector<8x1xf32> to vector<8x128xf32>
    %187 = vector.broadcast %185 : vector<1x128xf32> to vector<8x128xf32>
    %188 = arith.mulf %186, %187 : vector<8x128xf32>
    %189 = vector.extract_strided_slice %184 {offsets = [1, 0], sizes = [1, 128], strides = [1, 1]} : vector<3x128xf32> to vector<1x128xf32>
    %190 = vector.broadcast %169 : vector<8x1xf32> to vector<8x128xf32>
    %191 = vector.broadcast %189 : vector<1x128xf32> to vector<8x128xf32>
    %192 = arith.mulf %190, %191 : vector<8x128xf32>
    %193 = arith.addf %188, %192 : vector<8x128xf32>
    %194 = vector.extract_strided_slice %184 {offsets = [2, 0], sizes = [1, 128], strides = [1, 1]} : vector<3x128xf32> to vector<1x128xf32>
    %195 = vector.broadcast %173 : vector<8x1xf32> to vector<8x128xf32>
    %196 = vector.broadcast %194 : vector<1x128xf32> to vector<8x128xf32>
    %197 = arith.mulf %195, %196 : vector<8x128xf32>
    %198 = arith.addf %193, %197 : vector<8x128xf32>
    %199 = vector.broadcast %109 : vector<8x1xf32> to vector<8x128xf32>
    %200 = arith.mulf %198, %199 : vector<8x128xf32>
    %cst_78 = arith.constant 9.99999997E-7 : f32
    %201 = vector.broadcast %cst_78 : f32 to vector<8x128xf32>
    %202 = arith.maximumf %200, %201 : vector<8x128xf32>
    %203 = tpu.reciprocal %202 {approx = true} : vector<8x128xf32> -> vector<8x128xf32>
    %204 = arith.mulf %183, %203 : vector<8x128xf32>
    %c0_79 = arith.constant 0 : index
    %c0_80 = arith.constant 0 : index
    %205 = vector.load %arg15[%c0_79, %c0_80] : memref<8x128xf32, #tpu.memory_space<vmem>>, vector<8x128xf32>
    tpu.vector_store %arg15[%c0_79, %c0_80], %204 {strides = array<i32>} : memref<8x128xf32, #tpu.memory_space<vmem>>, vector<8x128xf32>,
    return
  }
  func.func @transform_0(%arg0: i32) -> (i32, i32) {
    %c0_i32 = arith.constant 0 : i32
    %c0_i32_0 = arith.constant 0 : i32
    return %arg0, %c0_i32 : i32, i32
  }
  func.func @transform_1(%arg0: i32) -> (i32, i32) {
    %c0_i32 = arith.constant 0 : i32
    %c0_i32_0 = arith.constant 0 : i32
    return %arg0, %c0_i32 : i32, i32
  }
  func.func @transform_2(%arg0: i32) -> (i32, i32, i32) {
    %c0_i32 = arith.constant 0 : i32
    %c0_i32_0 = arith.constant 0 : i32
    %c0_i32_1 = arith.constant 0 : i32
    return %c0_i32, %arg0, %c0_i32_0 : i32, i32, i32
  }
  func.func @transform_3(%arg0: i32) -> (i32, i32) {
    %c0_i32 = arith.constant 0 : i32
    %c0_i32_0 = arith.constant 0 : i32
    return %arg0, %c0_i32 : i32, i32
  }
  func.func @transform_4(%arg0: i32) -> (i32, i32) {
    %c0_i32 = arith.constant 0 : i32
    %c0_i32_0 = arith.constant 0 : i32
    %c0_i32_1 = arith.constant 0 : i32
    return %c0_i32, %c0_i32_0 : i32, i32
  }
  func.func @transform_5(%arg0: i32) -> (i32, i32) {
    %c0_i32 = arith.constant 0 : i32
    %c0_i32_0 = arith.constant 0 : i32
    %c0_i32_1 = arith.constant 0 : i32
    return %c0_i32, %c0_i32_0 : i32, i32
  }
  func.func @transform_6(%arg0: i32) -> (i32, i32) {
    %c0_i32 = arith.constant 0 : i32
    %c0_i32_0 = arith.constant 0 : i32
    %c0_i32_1 = arith.constant 0 : i32
    return %c0_i32, %c0_i32_0 : i32, i32
  }
  func.func @transform_7(%arg0: i32) -> (i32, i32) {
    %c0_i32 = arith.constant 0 : i32
    %c0_i32_0 = arith.constant 0 : i32
    %c0_i32_1 = arith.constant 0 : i32
    return %c0_i32, %c0_i32_0 : i32, i32
  }
  func.func @transform_8(%arg0: i32) -> (i32, i32) {
    %c0_i32 = arith.constant 0 : i32
    %c0_i32_0 = arith.constant 0 : i32
    %c0_i32_1 = arith.constant 0 : i32
    return %c0_i32, %c0_i32_0 : i32, i32
  }
  func.func @transform_9(%arg0: i32) -> (i32, i32, i32) {
    %c0_i32 = arith.constant 0 : i32
    %c0_i32_0 = arith.constant 0 : i32
    %c0_i32_1 = arith.constant 0 : i32
    %c0_i32_2 = arith.constant 0 : i32
    return %c0_i32, %c0_i32_0, %c0_i32_1 : i32, i32, i32
  }
  func.func @transform_10(%arg0: i32) -> (i32, i32, i32) {
    %c0_i32 = arith.constant 0 : i32
    %c0_i32_0 = arith.constant 0 : i32
    %c0_i32_1 = arith.constant 0 : i32
    %c0_i32_2 = arith.constant 0 : i32
    return %c0_i32, %c0_i32_0, %c0_i32_1 : i32, i32, i32
  }
  func.func @transform_11(%arg0: i32) -> (i32, i32, i32) {
    %c0_i32 = arith.constant 0 : i32
    %c0_i32_0 = arith.constant 0 : i32
    %c0_i32_1 = arith.constant 0 : i32
    %c0_i32_2 = arith.constant 0 : i32
    return %c0_i32, %c0_i32_0, %c0_i32_1 : i32, i32, i32
  }
  func.func @transform_12(%arg0: i32) -> (i32, i32, i32) {
    %c0_i32 = arith.constant 0 : i32
    %c0_i32_0 = arith.constant 0 : i32
    %c0_i32_1 = arith.constant 0 : i32
    %c0_i32_2 = arith.constant 0 : i32
    return %c0_i32, %c0_i32_0, %c0_i32_1 : i32, i32, i32
  }
  func.func @transform_13(%arg0: i32) -> (i32, i32) {
    %c0_i32 = arith.constant 0 : i32
    %c0_i32_0 = arith.constant 0 : i32
    return %arg0, %c0_i32 : i32, i32
  }
  func.func @transform_14(%arg0: i32) -> (i32, i32) {
    %c0_i32 = arith.constant 0 : i32
    %c0_i32_0 = arith.constant 0 : i32
    return %arg0, %c0_i32 : i32, i32
  }
}

</mosaic_0001>

<bundles_post_ra>
// kernel: tpu_custom_call.1
= control target key start
LH: loop header
LB: loop body
LE: loop exit
PB: predicated region body
PF: predicated region fallthrough
CT: control target
= control target key end

     0   :  { %20 = vsyncpa [#allocation3], 0  ;;  %s1475_s0 = inlined_call_operand.hbm [shape: f32[8,64], index: 0, kind: input, shape index: {}]   ;;  %s1476_s1 = inlined_call_operand.hbm [shape: f32[8,32], index: 1, kind: input, shape index: {}]   ;;  %s1477_s2 = inlined_call_operand.hbm [shape: f32[3,8,32], index: 2, kind: input, shape index: {}]   ;;  %s1478_s3 = inlined_call_operand.vmem [shape: f32[8,1], index: 3, kind: input, shape index: {}]   ;;  %s1479_s4 = inlined_call_operand.vmem [shape: bf16[96,128], index: 4, kind: input, shape index: {}]   ;;  %s1480_s5 = inlined_call_operand.hbm [shape: f32[3,128], index: 5, kind: input, shape index: {}]   ;;  %s1481_s6 = inlined_call_operand.vmem [shape: bf16[64,32], index: 6, kind: input, shape index: {}]   ;;  %s1482_s7 = inlined_call_operand.hbm [shape: f32[1,32], index: 7, kind: input, shape index: {}]   ;;  %s1483_s8 = inlined_call_operand.hbm [shape: bf16[32,96], index: 8, kind: input, shape index: {}]   ;;  %s1484_s9 = inlined_call_operand.hbm [shape: bf16[3,32,32], index: 9, kind: input, shape index: {}]   ;;  %s1485_s10 = inlined_call_operand.vmem [shape: f32[3,1,32], index: 10, kind: input, shape index: {}]   ;;  %s1486_s11 = inlined_call_operand.vmem [shape: f32[3,1,32], index: 11, kind: input, shape index: {}]   ;;  %s1487_s12 = inlined_call_operand.vmem [shape: f32[3,1,1], index: 12, kind: input, shape index: {}]   ;;  %s1488_s13 = inlined_call_operand.hbm [shape: f32[8,128], index: 13, kind: output, shape index: {0}]   ;;  %s1489_s14 = inlined_call_operand.hbm [shape: f32[8,128], index: 14, kind: output, shape index: {1}]  }
   0x1   :  { %21 = vsyncpa [#allocation6], 0 }
   0x2   :  { %22 = vsyncpa [#allocation9], 0 }
   0x3   :  { %23 = vsyncpa [#allocation12], 0 }
   0x4   :  { %24 = vsyncpa [#allocation4], 0  ;;  %s42_s15 = sshll.u32 %s1476_s1, 4  ;;  %s43_s15 = int_to_ptr.hbm [resolvable:$true] %s42_s15 }
   0x5   :  { %25 = vsyncpa [#allocation16], 0  ;;  %s1194_s16 = smov [#allocation5]   ;;  %s70_s20 = sshll.u32 %s1480_s5, 4  ;;  %s71_s20 = int_to_ptr.hbm [resolvable:$true] %s70_s20 }
   0x6   :  { %s44_s17 = sshll.u32 %s1194_s16, 4  ;;  %s1195_s21 = smov [#allocation8]   ;;  %s45_s17 = int_to_ptr.vmem [resolvable:$true] %s44_s17 }
   0x7   :  { %47 = dma.hbm_to_vmem [thread:$0]  %s43_s15, 128, %s45_s17, [#allocation6]  }
   0x8   :  { %s72_s22 = sshll.u32 %s1195_s21, 4  ;;  %s93_s25 = sshll.u32 %s1483_s8, 4  ;;  %s73_s22 = int_to_ptr.vmem [resolvable:$true] %s72_s22  ;;  %s94_s25 = int_to_ptr.hbm [resolvable:$true] %s93_s25 }
   0x9   :  { %75 = dma.hbm_to_vmem [thread:$0]  %s71_s20, 64, %s73_s22, [#allocation9]  }
   0xa   :  { %s1196_s1 = smov [#allocation11]   ;;  %s31_s29 = sshll.u32 %s1475_s0, 4  ;;  %s32_s29 = int_to_ptr.hbm [resolvable:$true] %s31_s29 }
   0xb   :  { %s95_s26 = sshll.u32 %s1196_s1, 4  ;;  %s1197_s30 = smov 64   ;;  %s96_s26 = int_to_ptr.vmem [resolvable:$true] %s95_s26 }
   0xc   :  { %s1198_s5 = smov 4   ;;  %s1199_s15 = smov [#allocation2]  }
   0xd   :  { %101 = dma.hbm_to_vmem [thread:$0]  %s94_s25, 256, %s96_s26, [#allocation12], %s1197_s30, %s1197_s30, %s1198_s5  }
   0xe   :  { %s33_s16 = sshll.u32 %s1199_s15, 4  ;;  %s52_s18 = sshll.u32 %s1477_s2, 4  ;;  %s34_s16 = int_to_ptr.vmem [resolvable:$true] %s33_s16  ;;  %s53_s18 = int_to_ptr.hbm [resolvable:$true] %s52_s18 }
   0xf   :  { %36 = dma.hbm_to_vmem [thread:$0]  %s32_s29, 128, %s34_s16, [#allocation3]  }
  0x10   :  { %s1200_s19 = smov [#allocation7]   ;;  %s83_s22 = sshll.u32 %s1482_s7, 4  ;;  %s84_s22 = int_to_ptr.hbm [resolvable:$true] %s83_s22 }
  0x11   :  { %s54_s20 = sshll.u32 %s1200_s19, 4  ;;  %s1201_s23 = smov 128   ;;  %s55_s20 = int_to_ptr.vmem [resolvable:$true] %s54_s20 }
  0x12   :  { %s1202_s24 = smov 8   ;;  %s1203_s25 = smov [#allocation10]  }
  0x13   :  { %60 = dma.hbm_to_vmem [thread:$0]  %s53_s18, 384, %s55_s20, [#allocation6], %s1201_s23, %s1201_s23, %s1202_s24  }
  0x14   :  { %s85_s1 = sshll.u32 %s1203_s25, 4  ;;  %s106_s2 = sshll.u32 %s1484_s9, 4  ;;  %s86_s1 = int_to_ptr.vmem [resolvable:$true] %s85_s1  ;;  %s107_s2 = int_to_ptr.hbm [resolvable:$true] %s106_s2 }
  0x15   :  { %88 = dma.hbm_to_vmem [thread:$0]  %s84_s22, 16, %s86_s1, [#allocation9]  }
  0x16   :  { %s1204_s28 = smov [#allocation13]  }
  0x17   :  { %s108_s29 = sshll.u32 %s1204_s28, 4  ;;  %s109_s29 = int_to_ptr.vmem [resolvable:$true] %s108_s29 }
  0x18   :  { %114 = dma.hbm_to_vmem [thread:$0]  %s107_s2, 768, %s109_s29, [#allocation12], %s1197_s30, %s1197_s30, %s1198_s5  }
  0x19   :  { %1182 = dma.done.wait [#allocation3], 128  }
  0x1a   :  { %1183 = vsyncadd [#allocation3], 4294967168 }
  0x1b   :  { %1184 = dma.done.wait [#allocation6], 512  }
  0x1c   :  { %1185 = vsyncadd [#allocation6], 4294966784 }
  0x1d   :  { %1186 = dma.done.wait [#allocation9], 80  }
  0x1e   :  { %1187 = vsyncadd [#allocation9], 4294967216 }
  0x1f   :  { %1188 = dma.done.wait [#allocation12], 1024  }
  0x20   :  { %1189 = vsyncadd [#allocation12], 4294966272  ;;  %v1205_v0 = vmov 0   ;;  %v882_v1 = vld [vmem:[%s1481_s6 + $0x18] sm:$0xff]  ;;  %v886_v2 = vld [vmem:[#allocation13 + $0x8] sm:$0xff]  ;;  %vm230_vm0 = vcmask 261120  }
  0x21   :  { %917 = vset.pattern.permute.xlu0 %v1205_v0  ;;  %923 = vset.pattern.permute.xlu2 %v1205_v0  ;;  %v881_v3 = vld [vmem:[%s1481_s6 + $0x10] sm:$0xff]  ;;  %v885_v4 = vld [vmem:[#allocation13] sm:$0xff]  ;;  %v880_v8 = vld [vmem:[%s1481_s6 + $0x8] sm:$0xff]  ;;  %v1206_v11 = vmov 0.0   ;;  %vm193_vm4 = vcmask 523264   ;;  %s1207_s0 = smov 32  }
  0x22   :  { %201 = vmatpush.bf16.msra.mxu0 %v882_v1  ;;  %283 = vmatpush.bf16.msra.mxu3 %v886_v2  ;;  %v1322_v5 = vld [vmem:[#allocation7] sm:$0xff]  ;;  %v155_v7 = vld [vmem:[%s1478_s3] sm:$0xff]  ;;  %v1337_v19 = vld [vmem:[#allocation7 + $0x8] sm:$0xff]  ;;  %vm722_vm6 = vcmask 785408   ;;  %s1210_s21 = smov 1   ;;  %s1211_s22 = smov [#allocation15]  }
  0x23   :  { %v888_v6 = vld [vmem:[#allocation13 + $0x18] sm:$0xff]  ;;  %vm639_vm1 = vcmp.eq.f32.partialorder %v155_v7, 1.0  ;;  %vm642_vm2 = vcmp.eq.f32.partialorder %v155_v7, 2.0  ;;  %vm636_vm3 = vcmp.eq.f32.partialorder %v155_v7, 0.0  ;;  %v247_v9 = vpack.c.bf16 %v1322_v5, %v1322_v5  ;;  %v887_v10 = vld [vmem:[#allocation13 + $0x10] sm:$0xff]  ;;  %v879_v16 = vld [vmem:[%s1481_s6] sm:$0xff] }
  0x24   :  { %v852_v12 = vsel %vm639_vm1, 1.0, %v1206_v11  ;;  %v853_v13 = vsel %vm642_vm2, 1.0, %v1206_v11  ;;  %v851_v14 = vsel %vm636_vm3, 1.0, %v1206_v11  ;;  %v150_v17 = vld [vmem:[#allocation2] sm:$0xff]  ;;  %v248_v20 = vpack.c.bf16 %v1337_v19, %v1337_v19  ;;  %v884_v21 = vld [vmem:[#allocation11 + $0x8] sm:$0xff]  ;;  %v883_v22 = vld [vmem:[#allocation11] sm:$0xff] }
  0x25   :  { %v918_v15 = vpack.i.bf16 %v853_v13, %v852_v12  ;;  %647 = vperm.xlu2 %923, %v851_v14   ;;  %v156_v18 = vpack.c.bf16 %v150_v17, %v150_v17  ;;  %240 = vmatpush.bf16.msra.mxu1 %v884_v21  ;;  %v739_v23 = vld [vmem:[#allocation8] sm:$0x7]  ;;  %v889_v35 = vld [vmem:[#allocation13 + $0x20] sm:$0xff]  ;;  %v924_v40 = vld [vmem:[#allocation10] ss:$0 sm:$0xff]  ;;  %v539_v59 = vmul.f32 %v1322_v5, %v1322_v5  ;;  %s769_s23 = sshll.u32 %s1211_s22, 4  ;;  %s770_s23 = int_to_ptr.vmem [resolvable:$true] %s769_s23 }
  0x26   :  { %202 = vmatpush.bf16.msra.mxu0 %v881_v3  ;;  %284 = vmatpush.bf16.msra.mxu3 %v885_v4  ;;  %v890_v24 = vld [vmem:[#allocation13 + $0x28] sm:$0xff]  ;;  %v740_v25 = vperm.slane %v739_v23, 0  ;;  %v742_v26 = vperm.slane %v739_v23, 1  ;;  %v745_v27 = vperm.slane %v739_v23, 2  ;;  %v926_v36 = vld [vmem:[%s1485_s10 + $0x1] ss:$0 sm:$0xff]  ;;  %v540_v61 = vmul.f32 %v1337_v19, %v1337_v19 }
  0x27   :  { %919 = vperm.xlu0 %917, %v918_v15   ;;  %411 = vrot.lane.b32.xlu1 %v926_v36, %s1207_s0  ;;  %v927_v39 = vld [vmem:[%s1486_s11 + $0x1] ss:$0 sm:$0xff]  ;;  %v925_v50 = vld [vmem:[%s1485_s10 + $0x2] ss:$0 sm:$0xff]  ;;  %v542_v60 = vsel %vm230_vm0, %v539_v59, 0.0  ;;  %v896_v62 = vld [vmem:[%s1479_s4 + $0x28] sm:$0xff] }
  0x28   :  { %v1365_v52 = vld [vmem:[#allocation7 + $0x10] sm:$0xff]  ;;  %728 = vmatpush.bf16.msra.mxu2 %v896_v62  ;;  %v545_v0 = vsel %vm230_vm0, %v540_v61, 0.0  ;;  %v894_v1 = vld [vmem:[%s1479_s4 + $0x18] sm:$0xff]  ;;  %v893_v2 = vld [vmem:[%s1479_s4 + $0x10] sm:$0xff]  ;;  %s771_s1 = sshll.u32 %s1489_s14, 4  ;;  %s1212_s26 = smov 3   ;;  %s772_s1 = int_to_ptr.hbm [resolvable:$true] %s771_s1 }
  0x29   :  { %823 = vmatmul.msk.bf16.vlgmr.msra.gmra.mxu3 %vm230_vm0, %v247_v9  ;;  %241 = vmatpush.bf16.msra.mxu1 %v883_v22  ;;  %v249_v53 = vpack.c.bf16 %v1365_v52, %v1365_v52  ;;  %v928_v56 = vld [vmem:[%s1486_s11 + $0x2] ss:$0 sm:$0xff]  ;;  %v892_v3 = vld [vmem:[%s1479_s4 + $0x8] sm:$0xff]  ;;  %s760_s7 = sshll.u32 %s1488_s13, 4  ;;  %s761_s7 = int_to_ptr.hbm [resolvable:$true] %s760_s7 }
  0x2a   :  { %311 = vmatpush.bf16.msrb.mxu3 %v888_v6  ;;  %203 = vmatpush.bf16.msra.mxu0 %v880_v8  ;;  %v895_v63 = vld [vmem:[%s1479_s4 + $0x20] sm:$0xff] }
  0x2b   :  { %v891_v4 = vld [vmem:[%s1479_s4] sm:$0xff]  ;;  %s1208_s4 = smov 96  }
  0x2c   :  { %729 = vmatpush.bf16.msra.mxu2 %v895_v63 }
  0x2d   :  { %339 = vmatpush.bf16.msrb.mxu1 %v890_v24 }
  0x2e   :  { %312 = vmatpush.bf16.msrb.mxu3 %v887_v10  ;;  %204 = vmatpush.bf16.msra.mxu0 %v879_v16 }
  0x2f   :  { %422 = vrot.lane.b32.xlu1 %v927_v39, %s1207_s0 }
  0x30   :  { %730 = vmatpush.bf16.msra.mxu2 %v894_v1 }
  0x31   :  { %805 = vmatmul.msk.bf16.vlgmr.msra.gmra.mxu0 %vm193_vm4, %v156_v18  ;;  %340 = vmatpush.bf16.msrb.mxu1 %v889_v35 }
  0x34   :  { %731 = vmatpush.bf16.msra.mxu2 %v893_v2 }
  0x38   :  { %732 = vmatpush.bf16.msra.mxu2 %v892_v3 }
  0x39   :  { %832 = vmatmul.msk.bf16.vlgmr.msrb.gmra.mxu3 %vm230_vm0, %v248_v20 }
  0x3c   :  { %733 = vmatpush.bf16.msra.mxu2 %v891_v4 }
  0x7f   :  { %v1342_v29 = vpop.permute.xlu2 %647 }
  0x80   :  { %v741_v32 = vmul.f32 %v740_v25, %v1342_v29 }
  0x99   :  { %v920_v28 = vpop.permute.xlu0 %919  ;;  %v412_v16 = vpop.permute.xlu1 %411 }
  0x9a   :  { %v922_v30 = vunpack.i.h.bf16 %v920_v28  ;;  %v921_v31 = vunpack.i.l.bf16 %v920_v28  ;;  %v541_v28 = vmul.f32 %v1365_v52, %v1365_v52 }
  0x9c   :  { %v746_v33 = vmul.f32 %v922_v30, %v745_v27  ;;  %v743_v34 = vmul.f32 %v921_v31, %v742_v26  ;;  %v929_v26 = vld [vmem:[%s1485_s10] ss:$0 sm:$0xff] }
  0x9e   :  { %v744_v37 = vadd.f32 %v743_v34, %v741_v32 }
  0xa0   :  { %v1348_v38 = vadd.f32 %v746_v33, %v744_v37 }
  0xa1   :  { %v423_v21 = vpop.permute.xlu1 %422 }
  0xac   :  { %v1353_v41 = vpop.f32.mrf.mxu3 }
  0xae   :  { %v206_v42 = vpop.f32.mrf.mxu0 }
  0xaf   :  { %v207_v43 = vadd.f32 %v924_v40, %v206_v42  ;;  %v151_v40 = vld [vmem:[#allocation5] sm:$0xff] }
  0xb1   :  { %vm210_vm5 = vcmp.ge.f32.partialorder %v207_v43, 0.0  ;;  %v211_v44 = vmul.f32 0.01, %v207_v43 }
  0xb3   :  { %v1355_v45 = vsel %vm210_vm5, %v207_v43, %v211_v44 }
  0xb4   :  { %v656_v46 = vmul.f32 %v921_v31, %v1355_v45  ;;  %v288_v47 = vpop.f32.mrf.mxu3  ;;  %v213_v48 = vpack.c.bf16 %v1355_v45, %v1355_v45  ;;  %v662_v54 = vmul.f32 %v922_v30, %v1355_v45  ;;  %v511_v57 = vmul.f32 %v1355_v45, %v1355_v45  ;;  %v930_v31 = vld [vmem:[%s1486_s11] ss:$0 sm:$0xff] }
  0xb5   :  { %v650_v9 = vmul.f32 %v1342_v29, %v1355_v45  ;;  %v548_v30 = vsel %vm230_vm0, %v541_v28, 0.0  ;;  %v529_v36 = vmul.f32 %v1355_v45, %v1365_v52  ;;  %v601_v44 = vmul.f32 %v1355_v45, %v151_v40 }
  0xb6   :  { %v208_v49 = vpop.f32.mrf.mxu0  ;;  %664 = vrot.lane.b32.xlu2 %v656_v46, %s1207_s0  ;;  %814 = vmatmul.msk.bf16.vlgmr.msra.gmra.mxu1 %vm230_vm0, %v213_v48  ;;  %v512_v58 = vsel %vm230_vm0, %v511_v57, 0.0 }
  0xb7   :  { %v536_v37 = vsel %vm230_vm0, %v529_v36, 0.0  ;;  %v602_v47 = vsel %vm230_vm0, %v601_v44, 0.0 }
  0xbc   :  { %v314_v51 = vpop.f32.mrf.mxu3 }
  0xbd   :  { %403 = vrot.lane.b32.xlu0 %v314_v51, %s1207_s0 }
  0xbe   :  { %355 = vrot.lane.b32.xlu2 %v925_v50, %s1197_s30 }
  0xc4   :  { %v316_v55 = vpop.f32.mrf.mxu3 }
  0xc5   :  { %668 = vrot.lane.b32.xlu0 %v662_v54, %s1197_s30 }
  0xc6   :  { %841 = vmatmul.msk.bf16.vlgmr.msrb.gmra.mxu1 %vm230_vm0, %v249_v53 }
  0xcd   :  { %366 = vrot.lane.b32.xlu0 %v928_v56, %s1197_s30 }
  0xe7   :  { %513 = vadd.xlane.f32.xlu2 %v512_v58 }
  0xef   :  { %543 = vadd.xlane.f32.xlu2 %v542_v60 }
  0xf7   :  { %546 = vadd.xlane.f32.xlu0 %v545_v0 }
 0x110   :  { %v665_v8 = vpop.permute.xlu2 %664 }
 0x111   :  { %v671_v10 = vsel %vm230_vm0, %v650_v9, %v665_v8  ;;  %v527_v9 = vmul.f32 %v1355_v45, %v1322_v5 }
 0x118   :  { %v356_v34 = vpop.permute.xlu2 %355 }
 0x12f   :  { %v404_v6 = vpop.permute.xlu0 %403 }
 0x133   :  { %v1403_v7 = vpop.f32.mrf.mxu1 }
 0x134   :  { %v406_v14 = vadd.f32 %v404_v6, %v1403_v7  ;;  %v458_v25 = vadd.f32 %v1353_v41, %v1403_v7  ;;  %v605_v41 = vmul.f32 %v151_v40, %v151_v40 }
 0x136   :  { %v414_v17 = vadd.f32 %v412_v16, %v406_v14  ;;  %v463_v27 = vadd.f32 %v929_v26, %v458_v25  ;;  %v606_v42 = vsel %vm230_vm0, %v605_v41, 0.0 }
 0x137   :  { %v669_v11 = vpop.permute.xlu0 %668 }
 0x138   :  { %v672_v12 = vsel %vm193_vm4, %v671_v10, %v669_v11  ;;  %v416_v18 = vmul.f32 0.01, %v414_v17  ;;  %vm415_vm7 = vcmp.ge.f32.partialorder %v414_v17, 0.0  ;;  %v465_v29 = vmul.f32 0.01, %v463_v27 }
 0x139   :  { %v673_v13 = vpack.c.bf16 %v672_v12, %v672_v12  ;;  %vm464_vm8 = vcmp.ge.f32.partialorder %v463_v27, 0.0  ;;  %v530_v10 = vsel %vm230_vm0, %v527_v9, 0.0  ;;  %v931_v12 = vld [vmem:[%s1487_s12] ss:$0 sm:$0xff] }
 0x13a   :  { %v417_v22 = vsel %vm415_vm7, %v414_v17, %v416_v18  ;;  %v466_v32 = vsel %vm464_vm8, %v463_v27, %v465_v29 }
 0x13b   :  { %v245_v15 = vpop.f32.mrf.mxu1  ;;  %878 = vmatmul.msk.bf16.vlgmr.msra.gmra.mxu2 %vm722_vm6, %v673_v13  ;;  %v425_v23 = vmul.f32 %v423_v21, %v417_v22  ;;  %v471_v33 = vmul.f32 %v930_v31, %v466_v32 }
 0x13d   :  { %v472_v35 = vsel %vm230_vm0, %v471_v33, 0.0 }
 0x13f   :  { %v367_v62 = vpop.permute.xlu0 %366 }
 0x143   :  { %v342_v20 = vpop.f32.mrf.mxu1 }
 0x144   :  { %347 = vrot.lane.b32.xlu1 %v342_v20, %s1197_s30 }
 0x14b   :  { %v344_v24 = vpop.f32.mrf.mxu1 }
 0x14c   :  { %427 = vrot.lane.b32.xlu1 %v425_v23, %s1208_s4 }
 0x15a   :  { %v514_v39 = vpop.xlane.xlu2 %513 }
 0x15b   :  { %934 = vrsqrt.f32 %v514_v39  ;;  %vm522_vm9 = vcmp.eq.f32.partialorder %v514_v39, inf  ;;  %v525_v54 = vand.u32 2147483648, %v514_v39  ;;  %vm524_vm10 = vcmp.eq.f32.partialorder %v514_v39, 0.0 }
 0x161   :  { %v935_v43 = vpop.eup %934 }
 0x162   :  { %v516_v46 = vmul.f32 %v935_v43, %v514_v39  ;;  %v544_v26 = vpop.xlane.xlu2 %543 }
 0x163   :  { %vm558_vm2 = vcmp.eq.f32.partialorder %v544_v26, inf  ;;  %vm560_vm5 = vcmp.eq.f32.partialorder %v544_v26, 0.0 }
 0x164   :  { %v517_v48 = vmul.f32 %v935_v43, %v516_v46 }
 0x166   :  { %v518_v49 = vmul.f32 0.5, %v517_v48 }
 0x168   :  { %v519_v50 = vsub.f32 1.5, %v518_v49 }
 0x16a   :  { %v520_v51 = vmul.f32 %v935_v43, %v519_v50  ;;  %v547_v27 = vpop.xlane.xlu0 %546  ;;  %v932_v43 = vld [vmem:[%s1487_s12 + $0x1] ss:$0 sm:$0xff] }
 0x16b   :  { %vm572_vm3 = vcmp.eq.f32.partialorder %v547_v27, 0.0 }
 0x16c   :  { %v521_v52 = vmul.f32 %v520_v51, %v514_v39 }
 0x16e   :  { %v523_v53 = vsel %vm522_vm9, %v514_v39, %v521_v52 }
 0x16f   :  { %v1429_v55 = vsel %vm524_vm10, %v525_v54, %v523_v53  ;;  %vm507_vm10 = vcmask 7168  }
 0x170   :  { %v748_v56 = vmul.f32 %v1348_v38, %v1429_v55  ;;  %v528_v38 = vmul.f32 %v1355_v45, %v1337_v19 }
 0x172   :  { %v749_v57 = vmax.f32 %v748_v56, 1e-06  ;;  %v533_v8 = vsel %vm230_vm0, %v528_v38, 0.0 }
 0x174   :  { %936 = vrcp.f32 %v749_v57 }
 0x176   :  { %549 = vadd.xlane.f32.xlu1 %v548_v30 }
 0x17a   :  { %v937_v0 = vpop.eup %936 }
 0x17e   :  { %473 = vadd.xlane.f32.xlu1 %v472_v35 }
 0x186   :  { %537 = vadd.xlane.f32.xlu1 %v536_v37 }
 0x18e   :  { %607 = vadd.xlane.f32.xlu1 %v606_v42 }
 0x196   :  { %603 = vadd.xlane.f32.xlu1 %v602_v47 }
 0x1b6   :  { %v348_v58 = vpop.permute.xlu1 %347 }
 0x1b7   :  { %v350_v59 = vadd.f32 %v348_v58, %v1403_v7  ;;  %v573_v58 = vand.u32 2147483648, %v547_v27 }
 0x1b9   :  { %v358_v60 = vadd.f32 %v356_v34, %v350_v59 }
 0x1bb   :  { %vm359_vm11 = vcmp.ge.f32.partialorder %v358_v60, 0.0  ;;  %v360_v61 = vmul.f32 0.01, %v358_v60 }
 0x1bd   :  { %v361_v63 = vsel %vm359_vm11, %v358_v60, %v360_v61  ;;  %vm509_vm11 = vcmask 15360  }
 0x1be   :  { %v735_v1 = vpop.f32.mrf.mxu2  ;;  %v428_v2 = vpop.permute.xlu1 %427  ;;  %v369_v3 = vmul.f32 %v367_v62, %v361_v63 }
 0x1bf   :  { %v751_v4 = vmul.f32 %v937_v0, %v735_v1  ;;  %v430_v6 = vsel %vm230_vm0, %v428_v2, 0.0  ;;  %v561_v0 = vand.u32 2147483648, %v544_v26 }
 0x1c0   :  { %371 = vrot.lane.b32.xlu2 %v369_v3, %s1197_s30  ;;  %431 = vadd.xlane.f32.xlu0 %v430_v6  ;;  %s1209_s30 = smov 2  }
 0x1c1   :  { %752 = vst [vmem:[#allocation15] sm:$0xff] %v751_v4 }
 0x1c2   :  { %774 = dma.vmem_to_hbm [thread:$0]  %s770_s23, 128, %s772_s1, [#allocation16]  }
 0x1c6   :  { %v737_v7 = vpop.f32.mrf.mxu2 }
 0x1c8   :  { %534 = vadd.xlane.f32.xlu0 %v533_v8 }
 0x1d0   :  { %531 = vadd.xlane.f32.xlu0 %v530_v10 }
 0x1e9   :  { %v1442_v11 = vpop.xlane.xlu1 %549 }
 0x1ea   :  { %vm582_vm1 = vcmp.eq.f32.partialorder %v1442_v11, inf  ;;  %v585_v60 = vand.u32 2147483648, %v1442_v11  ;;  %vm584_vm4 = vcmp.eq.f32.partialorder %v1442_v11, 0.0 }
 0x1f1   :  { %v474_v13 = vpop.xlane.xlu1 %473 }
 0x1f2   :  { %v479_v14 = vadd.f32 %v931_v12, %v474_v13 }
 0x1f4   :  { %v850_v15 = vmul.f32 -1.442695, %v479_v14 }
 0x1f6   :  { %938 = vpow2.f32 %v850_v15 }
 0x1fc   :  { %v939_v19 = vpop.eup %938 }
 0x1fd   :  { %v483_v16 = vadd.f32 1.0, %v939_v19 }
 0x1ff   :  { %940 = vrcp.f32 %v483_v16  ;;  %v495_v5 = vand.u32 2147483648, %v483_v16  ;;  %v493_v21 = vand.u32 2147483647, %v483_v16  ;;  %vm489_vm13 = vweird.f32 %v483_v16 }
 0x200   :  { %942 = vrsqrt.f32 %v547_v27 }
 0x201   :  { %v496_v23 = vor.u32 1.1754944e-38, %v495_v5  ;;  %vm494_vm15 = vcmp.eq.f32.partialorder %v493_v21, 8.507059e+37  ;;  %944 = vrsqrt.f32 %v1442_v11 }
 0x202   :  { %946 = vrsqrt.f32 %v544_v26 }
 0x205   :  { %v941_v17 = vpop.eup %940 }
 0x206   :  { %v485_v18 = vmul.f32 %v941_v17, %v483_v16  ;;  %vm490_vm12 = vweird.f32 %v941_v17  ;;  %v943_v30 = vpop.eup %942 }
 0x207   :  { %vm491_vm14 = vmor %vm489_vm13, %vm490_vm12  ;;  %v945_v31 = vpop.eup %944  ;;  %v564_v33 = vmul.f32 %v943_v30, %v547_v27 }
 0x208   :  { %v486_v20 = vsub.f32 1.0, %v485_v18  ;;  %v947_v32 = vpop.eup %946  ;;  %v576_v34 = vmul.f32 %v945_v31, %v1442_v11 }
 0x209   :  { %v552_v35 = vmul.f32 %v947_v32, %v544_v26  ;;  %v565_v36 = vmul.f32 %v943_v30, %v564_v33 }
 0x20a   :  { %v487_v45 = vmul.f32 %v941_v17, %v486_v20  ;;  %v577_v37 = vmul.f32 %v945_v31, %v576_v34 }
 0x20b   :  { %v553_v39 = vmul.f32 %v947_v32, %v552_v35  ;;  %v566_v40 = vmul.f32 0.5, %v565_v36 }
 0x20c   :  { %v488_v22 = vadd.f32 %v941_v17, %v487_v45  ;;  %v578_v41 = vmul.f32 0.5, %v577_v37 }
 0x20d   :  { %v554_v42 = vmul.f32 0.5, %v553_v39  ;;  %v567_v44 = vsub.f32 1.5, %v566_v40 }
 0x20e   :  { %v492_v24 = vsel %vm491_vm14, %v941_v17, %v488_v22  ;;  %v579_v46 = vsub.f32 1.5, %v578_v41 }
 0x20f   :  { %v497_v25 = vsel %vm494_vm15, %v496_v23, %v492_v24  ;;  %v555_v48 = vsub.f32 1.5, %v554_v42  ;;  %v568_v50 = vmul.f32 %v943_v30, %v567_v44 }
 0x210   :  { %504 = vrot.lane.b32.xlu1 %v497_v25, %s1209_s30  ;;  %v580_v52 = vmul.f32 %v945_v31, %v579_v46  ;;  %v538_v25 = vpop.xlane.xlu1 %537  ;;  %v933_v31 = vld [vmem:[%s1487_s12 + $0x2] ss:$0 sm:$0xff]  ;;  %s1213_s12 = smov [#allocation14]  }
 0x211   :  { %v556_v53 = vmul.f32 %v947_v32, %v555_v48  ;;  %v569_v54 = vmul.f32 %v568_v50, %v547_v27  ;;  %s758_s14 = sshll.u32 %s1213_s12, 4  ;;  %s759_s14 = int_to_ptr.vmem [resolvable:$true] %s758_s14 }
 0x212   :  { %v581_v56 = vmul.f32 %v580_v52, %v1442_v11 }
 0x213   :  { %v557_v57 = vmul.f32 %v556_v53, %v544_v26 }
 0x214   :  { %v583_v62 = vsel %vm582_vm1, %v1442_v11, %v581_v56 }
 0x215   :  { %v559_v1 = vsel %vm558_vm2, %v544_v26, %v557_v57  ;;  %v586_v3 = vsel %vm584_vm4, %v585_v60, %v583_v62  ;;  %vm629_vm2 = vcmask 23552   ;;  %vm633_vm4 = vcmask 56320  }
 0x216   :  { %v562_v4 = vsel %vm560_vm5, %v561_v0, %v559_v1  ;;  %v587_v38 = vmul.f32 %v586_v3, %v1429_v55 }
 0x217   :  { %v595_v7 = vmul.f32 %v562_v4, %v1429_v55 }
 0x218   :  { %v588_v13 = vmax.f32 %v587_v38, 1e-06  ;;  %v608_v30 = vpop.xlane.xlu1 %607 }
 0x219   :  { %v596_v11 = vmax.f32 %v595_v7, 1e-06  ;;  %vm616_vm12 = vcmp.eq.f32.partialorder %v608_v30, inf  ;;  %vm618_vm13 = vcmp.eq.f32.partialorder %v608_v30, 0.0 }
 0x21a   :  { %v372_v28 = vpop.permute.xlu2 %371 }
 0x21b   :  { %v374_v29 = vsel %vm230_vm0, %v372_v28, 0.0  ;;  %vm570_vm0 = vcmp.eq.f32.partialorder %v547_v27, inf }
 0x21c   :  { %375 = vadd.xlane.f32.xlu2 %v374_v29  ;;  %v571_v61 = vsel %vm570_vm0, %v547_v27, %v569_v54 }
 0x21d   :  { %v574_v2 = vsel %vm572_vm3, %v573_v58, %v571_v61  ;;  %vm631_vm3 = vcmask 48128  }
 0x21e   :  { %v591_v6 = vmul.f32 %v574_v2, %v1429_v55 }
 0x220   :  { %v592_v9 = vmax.f32 %v591_v6, 1e-06  ;;  %v604_v58 = vpop.xlane.xlu1 %603 }
 0x233   :  { %v432_v47 = vpop.xlane.xlu0 %431 }
 0x234   :  { %v438_v49 = vadd.f32 %v932_v43, %v432_v47  ;;  %v619_v47 = vand.u32 2147483648, %v608_v30 }
 0x236   :  { %v849_v51 = vmul.f32 -1.442695, %v438_v49 }
 0x238   :  { %948 = vpow2.f32 %v849_v51 }
 0x23b   :  { %v535_v10 = vpop.xlane.xlu0 %534 }
 0x23e   :  { %v949_v59 = vpop.eup %948 }
 0x23f   :  { %v442_v63 = vadd.f32 1.0, %v949_v59 }
 0x241   :  { %950 = vrcp.f32 %v442_v63  ;;  %v454_v15 = vand.u32 2147483648, %v442_v63  ;;  %v452_v16 = vand.u32 2147483647, %v442_v63  ;;  %vm448_vm7 = vweird.f32 %v442_v63 }
 0x242   :  { %952 = vrcp.f32 %v592_v9 }
 0x243   :  { %954 = vrcp.f32 %v588_v13  ;;  %v455_v18 = vor.u32 1.1754944e-38, %v454_v15  ;;  %vm453_vm9 = vcmp.eq.f32.partialorder %v452_v16, 8.507059e+37  ;;  %v532_v21 = vpop.xlane.xlu0 %531 }
 0x244   :  { %956 = vrcp.f32 %v596_v11 }
 0x245   :  { %958 = vrsqrt.f32 %v608_v30 }
 0x247   :  { %v951_v8 = vpop.eup %950 }
 0x248   :  { %v444_v12 = vmul.f32 %v951_v8, %v442_v63  ;;  %vm449_vm6 = vweird.f32 %v951_v8  ;;  %v953_v45 = vpop.eup %952 }
 0x249   :  { %vm450_vm8 = vmor %vm448_vm7, %vm449_vm6  ;;  %v955_v22 = vpop.eup %954  ;;  %v594_v24 = vmul.f32 %v953_v45, %v535_v10 }
 0x24a   :  { %v445_v14 = vsub.f32 1.0, %v444_v12  ;;  %v957_v23 = vpop.eup %956  ;;  %v590_v27 = vmul.f32 %v955_v22, %v538_v25 }
 0x24b   :  { %v598_v26 = vmul.f32 %v957_v23, %v532_v21  ;;  %v959_v34 = vpop.eup %958 }
 0x24c   :  { %v446_v19 = vmul.f32 %v951_v8, %v445_v14  ;;  %v599_v28 = vsel %vm507_vm10, %v590_v27, %v594_v24  ;;  %v610_v36 = vmul.f32 %v959_v34, %v608_v30 }
 0x24d   :  { %v600_v29 = vsel %vm509_vm11, %v599_v28, %v598_v26 }
 0x24e   :  { %v447_v17 = vadd.f32 %v951_v8, %v446_v19  ;;  %v611_v37 = vmul.f32 %v959_v34, %v610_v36 }
 0x250   :  { %v451_v20 = vsel %vm450_vm8, %v951_v8, %v447_v17  ;;  %v612_v40 = vmul.f32 0.5, %v611_v37 }
 0x251   :  { %v456_v5 = vsel %vm453_vm9, %v455_v18, %v451_v20 }
 0x252   :  { %500 = vrot.lane.b32.xlu0 %v456_v5, %s1210_s21  ;;  %v613_v42 = vsub.f32 1.5, %v612_v40 }
 0x254   :  { %v614_v43 = vmul.f32 %v959_v34, %v613_v42 }
 0x256   :  { %v615_v44 = vmul.f32 %v614_v43, %v608_v30 }
 0x258   :  { %v617_v48 = vsel %vm616_vm12, %v608_v30, %v615_v44 }
 0x259   :  { %v620_v50 = vsel %vm618_vm13, %v619_v47, %v617_v48 }
 0x25a   :  { %626 = vrot.lane.b32.xlu0 %v600_v29, %s1212_s26  ;;  %v621_v52 = vmul.f32 %v620_v50, %v1429_v55 }
 0x25c   :  { %v622_v54 = vmax.f32 %v621_v52, 1e-06 }
 0x282   :  { %v505_v55 = vpop.permute.xlu1 %504 }
 0x28f   :  { %v376_v32 = vpop.xlane.xlu2 %375 }
 0x290   :  { %v382_v33 = vadd.f32 %v933_v31, %v376_v32 }
 0x292   :  { %v845_v35 = vmul.f32 -1.442695, %v382_v33 }
 0x294   :  { %960 = vpow2.f32 %v845_v35 }
 0x29a   :  { %v961_v39 = vpop.eup %960 }
 0x29b   :  { %v386_v41 = vadd.f32 1.0, %v961_v39 }
 0x29d   :  { %962 = vrcp.f32 %v386_v41  ;;  %v398_v57 = vand.u32 2147483648, %v386_v41  ;;  %vm392_vm15 = vweird.f32 %v386_v41  ;;  %v396_v59 = vand.u32 2147483647, %v386_v41 }
 0x29e   :  { %964 = vrcp.f32 %v622_v54 }
 0x29f   :  { %v399_v62 = vor.u32 1.1754944e-38, %v398_v57  ;;  %vm397_vm1 = vcmp.eq.f32.partialorder %v396_v59, 8.507059e+37 }
 0x2a3   :  { %v963_v46 = vpop.eup %962 }
 0x2a4   :  { %v388_v49 = vmul.f32 %v963_v46, %v386_v41  ;;  %vm393_vm14 = vweird.f32 %v963_v46  ;;  %v965_v0 = vpop.eup %964 }
 0x2a5   :  { %vm394_vm0 = vmor %vm392_vm15, %vm393_vm14  ;;  %v624_v2 = vmul.f32 %v965_v0, %v604_v58 }
 0x2a6   :  { %v389_v51 = vsub.f32 1.0, %v388_v49 }
 0x2a8   :  { %v390_v53 = vmul.f32 %v963_v46, %v389_v51 }
 0x2aa   :  { %v391_v56 = vadd.f32 %v963_v46, %v390_v53 }
 0x2ac   :  { %v395_v61 = vsel %vm394_vm0, %v963_v46, %v391_v56 }
 0x2ad   :  { %v400_v63 = vsel %vm397_vm1, %v399_v62, %v395_v61 }
 0x2c4   :  { %v501_v60 = vpop.permute.xlu0 %500 }
 0x2c5   :  { %v508_v1 = vsel %vm507_vm10, %v400_v63, %v501_v60 }
 0x2c6   :  { %v510_v4 = vsel %vm509_vm11, %v508_v1, %v505_v55 }
 0x2cc   :  { %v627_v3 = vpop.permute.xlu0 %626 }
 0x2cd   :  { %v630_v6 = vsel %vm629_vm2, %v510_v4, %v627_v3 }
 0x2ce   :  { %v632_v38 = vsel %vm631_vm3, %v630_v6, %v624_v2 }
 0x2cf   :  { %v634_v7 = vsel %vm633_vm4, %v632_v38, 0.0 }
 0x2d0   :  { %635 = vst [vmem:[#allocation14] sm:$0xff] %v634_v7 }
 0x2d1   :  { %763 = dma.vmem_to_hbm [thread:$0]  %s759_s14, 128, %s761_s7, [#allocation4]  }
 0x2d2   :  { %1190 = dma.done.wait [#allocation4], 128  }
 0x2d3   :  { %1191 = vsyncadd [#allocation4], 4294967168 }
 0x2d4   :  { %1192 = dma.done.wait [#allocation16], 128  }
 0x2d5   :  { %1193 = vsyncadd [#allocation16], 4294967168 }
 0x2d6   :  { %783 = vsyncpa [#allocation3], 1 }
 0x2d7   :  { %784 = vsyncpa [#allocation6], 1 }
 0x2d8   :  { %785 = vsyncpa [#allocation9], 1 }
 0x2d9   :  { %786 = vsyncpa [#allocation12], 1 }
 0x2da   :  { %787 = vsyncpa [#allocation4], 1 }
 0x2db   :  { %788 = vsyncpa [#allocation16], 1 }

</bundles_post_ra>
